<compile_context>
chip_gen: v7x
topology: tpu7x:2x2x1
jax: 0.10.0
libtpu: 0.0.40
codegen_flags: <defaults>
</compile_context>

<pallas_src>
import functools

import jax
import jax.numpy as jnp
from jax.experimental import pallas as pl
from jax.experimental.pallas import tpu as pltpu


def _softplus(v):
    # matches F.softplus default (beta=1); numerically stable log(1+exp(v))
    return jnp.logaddexp(v, 0.0)


def _round_up(x, m):
    return ((x + m - 1) // m) * m


def make_icnn_kernel(out_sizes, dim, eps):
    """out_sizes = layer_sizes[1:] (per-layer output widths, last must be 1).

    Feature-major layout inside the kernel (batch rides the 128-lane axis):
      x_ref    : (dim, TB)
      t_ref    : (1, TB)
      wcat_ref : (L_total, dim + 2)   rows = stacked layers, cols = [x | t | bias]
      spU_i    : (l_{i+1}, l_i)       = softplus(U_i) / U_i.shape[0]  (pre-scaled)
      out_ref  : (1, TB)
      aug_ref  : (dim + 2, TB)        VMEM scratch holding [x; t; 1]
    """
    n_layers = len(out_sizes)
    offs = [0]
    for l in out_sizes:
        offs.append(offs[-1] + l)

    def kernel(x_ref, t_ref, wcat_ref, *args):
        aug_ref = args[-1]                    # scratch
        out_ref = args[-2]
        spUs = args[:-2]                      # n_layers - 1 refs

        x = x_ref[...]                        # (dim, TB)
        tt = t_ref[...]                       # (1, TB)

        # assemble aug = [x; t; 1]  (ones row folds the biases into wcat)
        aug_ref[0:dim, :] = x
        aug_ref[dim:dim + 1, :] = tt
        aug_ref[dim + 1:dim + 2, :] = jnp.ones_like(tt)

        # all layers' W @ aug (+ bias) in a single MXU pass
        zw_all = jnp.dot(wcat_ref[...], aug_ref[...],
                         preferred_element_type=jnp.float32)   # (L_total, TB)

        # z = act(W0 @ aug + b0)
        z = _softplus(zw_all[offs[0]:offs[1], :])

        # hidden convex layers: z = act(W @ aug + b + (sp(U)/n) @ z)
        for i in range(1, n_layers - 1):
            zu = jnp.dot(spUs[i - 1][...], z,
                         preferred_element_type=jnp.float32)
            z = _softplus(zw_all[offs[i]:offs[i + 1], :] + zu)

        # final layer + eps * ||aug_x||^2   (aug_x excludes the ones row)
        zu = jnp.dot(spUs[n_layers - 2][...], z,
                     preferred_element_type=jnp.float32)        # (1, TB)
        quad = eps * (jnp.sum(x * x, axis=0, keepdims=True) + tt * tt)
        out_ref[...] = (zw_all[offs[-2]:offs[-1], :] + zu + quad
                        ).astype(out_ref.dtype)

    return kernel


def init_icnn_params(key, layer_sizes):
    """Deterministic init mirroring the PyTorch shapes/bounds.

    kaiming_uniform_(a=sqrt(5)) on a (out, in) matrix gives bound 1/sqrt(fan_in);
    bias bound is 1/sqrt(fan_in of W[i]) = 1/sqrt(layer_sizes[0])."""
    d0 = layer_sizes[0]
    Ws, Us, bs = [], [], []
    for l in layer_sizes[1:]:
        key, k = jax.random.split(key)
        bound = 1.0 / (d0 ** 0.5)
        Ws.append(jax.random.uniform(k, (l, d0), jnp.float32, -bound, bound))
    for i in range(1, len(layer_sizes) - 1):
        key, k = jax.random.split(key)
        fan_in = layer_sizes[i]
        bound = 1.0 / (fan_in ** 0.5)
        Us.append(jax.random.uniform(
            k, (layer_sizes[i + 1], layer_sizes[i]), jnp.float32, -bound, bound))
    for l in layer_sizes[1:]:
        key, k = jax.random.split(key)
        bound = 1.0 / (d0 ** 0.5)
        bs.append(jax.random.uniform(k, (l,), jnp.float32, -bound, bound))
    return Ws, bs, Us


@functools.partial(jax.jit, static_argnames=("eps", "max_tile"))
def icnn_forward(t, x, Ws, bs, Us, eps=0.01, max_tile=8192):
    shape = x.shape
    nsim, dim = shape[0], shape[-1]
    n_layers = len(Ws)
    out_sizes = [int(W.shape[0]) for W in Ws]
    if n_layers < 2 or len(Us) != n_layers - 1:
        # PyTorch module also requires >= 1 hidden layer (it indexes U[-1]).
        raise ValueError("ICNN kernel requires at least one hidden layer")
    if out_sizes[-1] != 1:
        raise ValueError("final layer width must be 1")

    # ---- batch tiling: lane-aligned tile, grid >= 2 when possible (v7x) ----
    lanes = _round_up(nsim, 128)
    tb = min(_round_up(min(max_tile, lanes), 128), lanes)
    if tb >= lanes and lanes >= 256:
        tb = _round_up(lanes // 2, 128)          # split across 2 TensorCores
    npad = _round_up(nsim, tb)
    grid = npad // tb

    # ---- single fused layout pass per input (no concat / zeros+set) ----
    x2 = x.reshape(nsim, dim).astype(jnp.float32)
    x_t = jnp.pad(x2.T, ((0, 0), (0, npad - nsim)))             # (dim, npad)
    if t.ndim == 0:
        t_t = jnp.full((1, npad), t, jnp.float32)
    else:
        t_t = jnp.pad(t.reshape(1, nsim).astype(jnp.float32),
                      ((0, 0), (0, npad - nsim)))               # (1, npad)

    # ---- hoisted, once-per-call parameter prep (tiny matrices) ----
    Ws32 = [W.astype(jnp.float32) for W in Ws]                  # (l, dim+1)
    bs32 = [b.reshape(-1, 1).astype(jnp.float32) for b in bs]   # (l, 1)
    # fold bias column, stack all layers: (L_total, dim + 2)
    wcat = jnp.concatenate(
        [jnp.concatenate([W, b], axis=1) for W, b in zip(Ws32, bs32)], axis=0)
    spUs = [jnp.logaddexp(U.astype(jnp.float32), 0.0) * (1.0 / U.shape[0])
            for U in Us]                                        # sp(U)/n

    kernel = make_icnn_kernel(out_sizes, dim, eps)

    in_specs = [
        pl.BlockSpec((dim, tb), lambda i: (0, i)),              # x^T, streamed
        pl.BlockSpec((1, tb), lambda i: (0, i)),                # t,   streamed
        pl.BlockSpec(wcat.shape, lambda i: (0, 0)),             # resident
    ]
    in_specs += [pl.BlockSpec(U.shape, lambda i: (0, 0)) for U in spUs]

    # advisory cost estimate for the XLA scheduler
    L_total = sum(out_sizes)
    flops = 2 * nsim * (L_total * (dim + 2)
                        + sum(int(U.shape[0] * U.shape[1]) for U in Us))
    transc = 2 * nsim * sum(out_sizes[:-1])     # softplus ~= exp + log / elem
    bytes_acc = 4 * (npad * dim + npad + npad
                     + int(wcat.size) + sum(int(U.size) for U in spUs))

    out_t = pl.pallas_call(
        kernel,
        out_shape=jax.ShapeDtypeStruct((1, npad), jnp.float32),
        grid=(grid,),
        in_specs=in_specs,
        out_specs=pl.BlockSpec((1, tb), lambda i: (0, i)),
        scratch_shapes=[pltpu.VMEM((dim + 2, tb), jnp.float32)],
        compiler_params=pltpu.CompilerParams(
            dimension_semantics=("parallel",),
            vmem_limit_bytes=(64 * 1024 * 1024 if tb >= 16384 else None)),
        cost_estimate=pl.CostEstimate(
            flops=int(flops),
            transcendentals=int(transc),
            bytes_accessed=int(bytes_acc)),
    )(x_t, t_t, wcat, *spUs)

    return out_t[0, :nsim].reshape(nsim, 1, 1)


def icnn_reference(t, x, Ws, bs, Us, eps=0.01):
    """Pure-JAX reference replicating the PyTorch forward exactly."""
    shape = x.shape
    nsim, dim = shape[0], shape[-1]
    x2 = x.reshape(nsim, dim)
    if t.ndim == 0:
        t2 = jnp.ones((nsim, 1), x2.dtype) * t
    else:
        t2 = t.reshape(nsim, 1).astype(x2.dtype)
    aug = jnp.concatenate([x2, t2], axis=1)
    sp = lambda v: jnp.logaddexp(v, 0.0)
    z = sp(aug @ Ws[0].T + bs[0])
    for W, b, U in zip(Ws[1:-1], bs[1:-1], Us[:-1]):
        z = sp(aug @ W.T + b + (z @ sp(U).T) / U.shape[0])
    out = (aug @ Ws[-1].T + bs[-1]
           + (z @ sp(Us[-1]).T) / Us[-1].shape[0]
           + eps * jnp.sum(aug ** 2, axis=1, keepdims=True))
    return out.reshape(nsim, 1, 1)


if __name__ == "__main__":
    key = jax.random.PRNGKey(0)

    # layer_sizes[0] must equal dim + 1 (x concatenated with t)
    dim = 4
    layer_sizes = [dim + 1, 32, 32, 1]
    eps = 0.01

    kx, kx2, kt, kp = jax.random.split(key, 4)
    Ws, bs, Us = init_icnn_params(kp, layer_sizes)

    # --- small case (single grid step, scalar t branch) ---
    nsim = 8
    x = jax.random.normal(kx, (nsim, 1, dim), jnp.float32)
    t = jnp.float32(0.5)

    out = icnn_forward(t, x, Ws, bs, Us, eps=eps)
    out = jax.block_until_ready(out)
    ref = icnn_reference(t, x, Ws, bs, Us, eps=eps)
    assert out.shape == (nsim, 1, 1), out.shape
    assert jnp.allclose(out, ref, atol=1e-5, rtol=1e-5), (out, ref)

    # --- larger case exercising the batch grid (3 tiles of 128, per-sample t) ---
    nsim2 = 300
    x2 = jax.random.normal(kx2, (nsim2, 1, dim), jnp.float32)
    t2 = jax.random.normal(kt, (nsim2, 1), jnp.float32)

    out2 = icnn_forward(t2, x2, Ws, bs, Us, eps=eps, max_tile=128)
    out2 = jax.block_until_ready(out2)
    ref2 = icnn_reference(t2, x2, Ws, bs, Us, eps=eps)
    assert out2.shape == (nsim2, 1, 1), out2.shape
    assert jnp.allclose(out2, ref2, atol=1e-5, rtol=1e-5), (out2, ref2)

    # --- default tiling path (auto-split into 2 tiles for dual-TC sharding) ---
    out3 = icnn_forward(t2, x2, Ws, bs, Us, eps=eps)
    out3 = jax.block_until_ready(out3)
    assert jnp.allclose(out3, ref2, atol=1e-5, rtol=1e-5), (out3, ref2)

    print("KERNEL_OK")
</pallas_src>

<mosaic_0001>
module attributes {stable_mosaic.version = 11 : i64} {
  func.func @kernel(%arg0: i32, %arg1: memref<4x128xf32, #tpu.memory_space<vmem>>, %arg2: memref<1x128xf32, #tpu.memory_space<vmem>>, %arg3: memref<65x6xf32, #tpu.memory_space<vmem>>, %arg4: memref<32x32xf32, #tpu.memory_space<vmem>>, %arg5: memref<1x32xf32, #tpu.memory_space<vmem>>, %arg6: memref<1x128xf32, #tpu.memory_space<vmem>>, %arg7: memref<6x128xf32, #tpu.memory_space<vmem>>) attributes {dimension_semantics = [#tpu.dimension_semantics<parallel>], iteration_bounds = array<i64: 1>, scalar_prefetch = 0 : i64, scratch_operands = 1 : i64, tpu.core_type = #tpu.core_type<tc>, window_params = [{transform_indices = @transform_0, window_bounds = array<i64: 4, 128>}, {transform_indices = @transform_1, window_bounds = array<i64: 1, 128>}, {pipeline_mode = #tpu.pipeline_mode<synchronous>, transform_indices = @transform_2, window_bounds = array<i64: 65, 6>}, {pipeline_mode = #tpu.pipeline_mode<synchronous>, transform_indices = @transform_3, window_bounds = array<i64: 32, 32>}, {pipeline_mode = #tpu.pipeline_mode<synchronous>, transform_indices = @transform_4, window_bounds = array<i64: 1, 32>}, {transform_indices = @transform_5, window_bounds = array<i64: 1, 128>}]} {
    %c0 = arith.constant 0 : index
    %c0_0 = arith.constant 0 : index
    %0 = vector.load %arg1[%c0, %c0_0] : memref<4x128xf32, #tpu.memory_space<vmem>>, vector<4x128xf32>
    %c0_1 = arith.constant 0 : index
    %c0_2 = arith.constant 0 : index
    %1 = vector.load %arg2[%c0_1, %c0_2] : memref<1x128xf32, #tpu.memory_space<vmem>>, vector<1x128xf32>
    %c0_3 = arith.constant 0 : index
    %c0_4 = arith.constant 0 : index
    %2 = vector.load %arg7[%c0_3, %c0_4] : memref<6x128xf32, #tpu.memory_space<vmem>>, vector<4x128xf32>
    tpu.vector_store %arg7[%c0_3, %c0_4], %0 {strides = array<i32>} : memref<6x128xf32, #tpu.memory_space<vmem>>, vector<4x128xf32>,
    %c4 = arith.constant 4 : index
    %c0_5 = arith.constant 0 : index
    %3 = vector.load %arg7[%c4, %c0_5] : memref<6x128xf32, #tpu.memory_space<vmem>>, vector<1x128xf32>
    tpu.vector_store %arg7[%c4, %c0_5], %1 {strides = array<i32>} : memref<6x128xf32, #tpu.memory_space<vmem>>, vector<1x128xf32>,
    %cst = arith.constant 1.000000e+00 : f32
    %4 = vector.broadcast %cst : f32 to vector<1x128xf32>
    %c5 = arith.constant 5 : index
    %c0_6 = arith.constant 0 : index
    %5 = vector.load %arg7[%c5, %c0_6] : memref<6x128xf32, #tpu.memory_space<vmem>>, vector<1x128xf32>
    tpu.vector_store %arg7[%c5, %c0_6], %4 {strides = array<i32>} : memref<6x128xf32, #tpu.memory_space<vmem>>, vector<1x128xf32>,
    %c0_7 = arith.constant 0 : index
    %c0_8 = arith.constant 0 : index
    %6 = vector.load %arg3[%c0_7, %c0_8] : memref<65x6xf32, #tpu.memory_space<vmem>>, vector<65x6xf32>
    %c0_9 = arith.constant 0 : index
    %c0_10 = arith.constant 0 : index
    %7 = vector.load %arg7[%c0_9, %c0_10] : memref<6x128xf32, #tpu.memory_space<vmem>>, vector<6x128xf32>
    %cst_11 = arith.constant dense<0.000000e+00> : vector<65x128xf32>
    %8 = tpu.matmul %6, %7, %cst_11 {dimension_numbers = #tpu.dot_dimension_numbers<[1], [0], [0], [1], [0, 0, 1, 1], [], []>} : vector<65x6xf32>, vector<6x128xf32>, vector<65x128xf32> -> vector<65x128xf32>
    %9 = vector.extract_strided_slice %8 {offsets = [0, 0], sizes = [32, 128], strides = [1, 1]} : vector<65x128xf32> to vector<32x128xf32>
    %cst_12 = arith.constant 0.000000e+00 : f32
    %10 = vector.broadcast %cst_12 : f32 to vector<32x128xf32>
    %11 = arith.maximumf %9, %10 : vector<32x128xf32>
    %12 = vector.broadcast %cst_12 : f32 to vector<32x128xf32>
    %13 = arith.subf %9, %12 : vector<32x128xf32>
    %14 = arith.cmpf one, %13, %13 : vector<32x128xf32>
    %15 = vector.broadcast %cst_12 : f32 to vector<32x128xf32>
    %16 = arith.addf %9, %15 : vector<32x128xf32>
    %17 = math.absf %13 : vector<32x128xf32>
    %cst_13 = arith.constant 0.000000e+00 : f32
    %18 = vector.broadcast %cst_13 : f32 to vector<32x128xf32>
    %19 = arith.subf %18, %17 : vector<32x128xf32>
    %20 = math.exp %19 : vector<32x128xf32>
    %21 = math.log1p %20 : vector<32x128xf32>
    %22 = arith.addf %11, %21 : vector<32x128xf32>
    %23 = arith.select %14, %16, %22 : vector<32x128xi1>, vector<32x128xf32>
    %c0_14 = arith.constant 0 : index
    %c0_15 = arith.constant 0 : index
    %24 = vector.load %arg4[%c0_14, %c0_15] : memref<32x32xf32, #tpu.memory_space<vmem>>, vector<32x32xf32>
    %cst_16 = arith.constant dense<0.000000e+00> : vector<32x128xf32>
    %25 = tpu.matmul %24, %23, %cst_16 {dimension_numbers = #tpu.dot_dimension_numbers<[1], [0], [0], [1], [0, 0, 1, 1], [], []>} : vector<32x32xf32>, vector<32x128xf32>, vector<32x128xf32> -> vector<32x128xf32>
    %26 = vector.extract_strided_slice %8 {offsets = [32, 0], sizes = [32, 128], strides = [1, 1]} : vector<65x128xf32> to vector<32x128xf32>
    %27 = arith.addf %26, %25 : vector<32x128xf32>
    %cst_17 = arith.constant 0.000000e+00 : f32
    %28 = vector.broadcast %cst_17 : f32 to vector<32x128xf32>
    %29 = arith.maximumf %27, %28 : vector<32x128xf32>
    %30 = vector.broadcast %cst_17 : f32 to vector<32x128xf32>
    %31 = arith.subf %27, %30 : vector<32x128xf32>
    %32 = arith.cmpf one, %31, %31 : vector<32x128xf32>
    %33 = vector.broadcast %cst_17 : f32 to vector<32x128xf32>
    %34 = arith.addf %27, %33 : vector<32x128xf32>
    %35 = math.absf %31 : vector<32x128xf32>
    %cst_18 = arith.constant 0.000000e+00 : f32
    %36 = vector.broadcast %cst_18 : f32 to vector<32x128xf32>
    %37 = arith.subf %36, %35 : vector<32x128xf32>
    %38 = math.exp %37 : vector<32x128xf32>
    %39 = math.log1p %38 : vector<32x128xf32>
    %40 = arith.addf %29, %39 : vector<32x128xf32>
    %41 = arith.select %32, %34, %40 : vector<32x128xi1>, vector<32x128xf32>
    %c0_19 = arith.constant 0 : index
    %c0_20 = arith.constant 0 : index
    %42 = vector.load %arg5[%c0_19, %c0_20] : memref<1x32xf32, #tpu.memory_space<vmem>>, vector<1x32xf32>
    %cst_21 = arith.constant dense<0.000000e+00> : vector<1x128xf32>
    %43 = tpu.matmul %42, %41, %cst_21 {dimension_numbers = #tpu.dot_dimension_numbers<[1], [0], [0], [1], [0, 0, 1, 1], [], []>} : vector<1x32xf32>, vector<32x128xf32>, vector<1x128xf32> -> vector<1x128xf32>
    %44 = arith.mulf %0, %0 : vector<4x128xf32>
    %cst_22 = arith.constant dense<0.000000e+00> : vector<128xf32>
    %45 = vector.multi_reduction <add>, %44, %cst_22 [0] : vector<4x128xf32> to vector<128xf32>
    %46 = vector.shape_cast %45 : vector<128xf32> to vector<1x128xf32>
    %47 = arith.mulf %1, %1 : vector<1x128xf32>
    %48 = arith.addf %46, %47 : vector<1x128xf32>
    %cst_23 = arith.constant 0.00999999977 : f32
    %49 = vector.broadcast %cst_23 : f32 to vector<1x128xf32>
    %50 = arith.mulf %49, %48 : vector<1x128xf32>
    %51 = vector.extract_strided_slice %8 {offsets = [64, 0], sizes = [1, 128], strides = [1, 1]} : vector<65x128xf32> to vector<1x128xf32>
    %52 = arith.addf %51, %43 : vector<1x128xf32>
    %53 = arith.addf %52, %50 : vector<1x128xf32>
    %c0_24 = arith.constant 0 : index
    %c0_25 = arith.constant 0 : index
    %54 = vector.load %arg6[%c0_24, %c0_25] : memref<1x128xf32, #tpu.memory_space<vmem>>, vector<1x128xf32>
    tpu.vector_store %arg6[%c0_24, %c0_25], %53 {strides = array<i32>} : memref<1x128xf32, #tpu.memory_space<vmem>>, vector<1x128xf32>,
    return
  }
  func.func @transform_0(%arg0: i32) -> (i32, i32) {
    %c0_i32 = arith.constant 0 : i32
    %c0_i32_0 = arith.constant 0 : i32
    return %c0_i32, %arg0 : i32, i32
  }
  func.func @transform_1(%arg0: i32) -> (i32, i32) {
    %c0_i32 = arith.constant 0 : i32
    %c0_i32_0 = arith.constant 0 : i32
    return %c0_i32, %arg0 : i32, i32
  }
  func.func @transform_2(%arg0: i32) -> (i32, i32) {
    %c0_i32 = arith.constant 0 : i32
    %c0_i32_0 = arith.constant 0 : i32
    %c0_i32_1 = arith.constant 0 : i32
    return %c0_i32, %c0_i32_0 : i32, i32
  }
  func.func @transform_3(%arg0: i32) -> (i32, i32) {
    %c0_i32 = arith.constant 0 : i32
    %c0_i32_0 = arith.constant 0 : i32
    %c0_i32_1 = arith.constant 0 : i32
    return %c0_i32, %c0_i32_0 : i32, i32
  }
  func.func @transform_4(%arg0: i32) -> (i32, i32) {
    %c0_i32 = arith.constant 0 : i32
    %c0_i32_0 = arith.constant 0 : i32
    %c0_i32_1 = arith.constant 0 : i32
    return %c0_i32, %c0_i32_0 : i32, i32
  }
  func.func @transform_5(%arg0: i32) -> (i32, i32) {
    %c0_i32 = arith.constant 0 : i32
    %c0_i32_0 = arith.constant 0 : i32
    return %c0_i32, %arg0 : i32, i32
  }
}

</mosaic_0001>

<bundles_post_ra>
// kernel: icnn_forward.1
= control target key start
LH: loop header
LB: loop body
LE: loop exit
PB: predicated region body
PF: predicated region fallthrough
CT: control target
= control target key end

     0   :  { %v664_v0 = vmov 0.0   ;;  %v665_v3 = vmov 1.0   ;;  %vm666_vm0 = vmmov 0   ;;  %vm63_vm1 = vcmask 1045504   ;;  %s856_s0 = inlined_call_operand.vmem [shape: f32[4,128], index: 0, kind: input, shape index: {}]   ;;  %s857_s1 = inlined_call_operand.vmem [shape: f32[1,128], index: 1, kind: input, shape index: {}]   ;;  %s858_s2 = inlined_call_operand.vmem [shape: f32[65,6], index: 2, kind: input, shape index: {}]   ;;  %s859_s3 = inlined_call_operand.vmem [shape: f32[32,32], index: 3, kind: input, shape index: {}]   ;;  %s860_s4 = inlined_call_operand.vmem [shape: f32[1,32], index: 4, kind: input, shape index: {}]   ;;  %s861_s5 = inlined_call_operand.vmem [shape: f32[1,128], index: 5, kind: output, shape index: {}]  }
   0x1   :  { %558 = vmatprep.subr.mxu0 %v664_v0  ;;  %v702_v1 = vld [vmem:[%s856_s0] sm:$0xf]  ;;  %24 = vst [vmem:[#allocation2 + $0x5] sm:$0x1] %v665_v3  ;;  %560 = vmatprep.mubr.msk.f32.mxu0 %vm666_vm0, %v664_v0  ;;  %vm35_vm2 = vcmask 48128   ;;  %v26_v6 = vld [vmem:[%s858_s2 + $0x8] sm:$0xff] }
   0x2   :  { %v707_v2 = vld [vmem:[%s857_s1] sm:$0x1]  ;;  %22 = vst [vmem:[#allocation2] sm:$0xf] %v702_v1  ;;  %626 = vmatprep.subr.mxu1 %v664_v0  ;;  %578 = vmatprep.mubr.msk.f32.mxu1 %vm666_vm0, %v664_v0  ;;  %v27_v7 = vld [vmem:[%s858_s2 + $0x10] sm:$0xff]  ;;  %v28_v8 = vld [vmem:[%s858_s2 + $0x18] sm:$0xff] }
   0x3   :  { %23 = vst [vmem:[#allocation2 + $0x4] sm:$0x1] %v707_v2  ;;  %v25_v4 = vld [vmem:[%s858_s2] sm:$0xff]  ;;  %v31_v9 = vld [vmem:[%s858_s2 + $0x30] sm:$0xff]  ;;  %v32_v10 = vld [vmem:[%s858_s2 + $0x38] sm:$0xff]  ;;  %vm253_vm3 = vcmask 261120  }
   0x4   :  { %v29_v11 = vld [vmem:[%s858_s2 + $0x20] sm:$0xff]  ;;  %v30_v13 = vld [vmem:[%s858_s2 + $0x28] sm:$0xff] }
   0x5   :  { %v33_v12 = vld [vmem:[%s858_s2 + $0x40] sm:$0x1] }
   0x6   :  { %v249_v14 = vld [vmem:[%s859_s3] sm:$0xff] }
   0xa   :  { %v34_v5 = vld [vmem:[#allocation2] sm:$0x3f] }
   0xb   :  { %559 = vmatpush3.msk.msra.mxu0 %vm63_vm1, %v34_v5  ;;  %627 = vmatpush3.msk.msra.mxu1 %vm63_vm1, %v34_v5 }
   0xc   :  { %561 = vmatmul.mubr.msk.f32.vlgmr.msra.gmra.mrb[0].mxu0 %vm35_vm2, %v25_v4  ;;  %579 = vmatmul.mubr.msk.f32.vlgmr.msra.gmra.mrb[0].mxu1 %vm35_vm2, %v31_v9 }
   0xd   :  { %563 = vmatprep.mubr.msk.f32.mxu0 %vm666_vm0, %v664_v0  ;;  %581 = vmatprep.mubr.msk.f32.mxu1 %vm666_vm0, %v664_v0 }
  0x10   :  { %564 = vmatmul.mubr.msk.f32.gmra.mrb[2].mxu0 %vm35_vm2, %v26_v6  ;;  %582 = vmatmul.mubr.msk.f32.gmra.mrb[2].mxu1 %vm35_vm2, %v32_v10 }
  0x11   :  { %566 = vmatprep.mubr.msk.f32.mxu0 %vm666_vm0, %v664_v0  ;;  %584 = vmatprep.mubr.msk.f32.mxu1 %vm666_vm0, %v664_v0 }
  0x14   :  { %567 = vmatmul.mubr.msk.f32.gmra.mrb[4].mxu0 %vm35_vm2, %v27_v7  ;;  %585 = vmatmul.mubr.msk.f32.gmra.mrb[4].mxu1 %vm35_vm2, %v33_v12 }
  0x15   :  { %569 = vmatprep.mubr.msk.f32.mxu0 %vm666_vm0, %v664_v0  ;;  %595 = vmatprep.mubr.msk.f32.mxu1 %vm253_vm3, %v249_v14 }
  0x18   :  { %570 = vmatmul.mubr.msk.f32.gmra.mrb[6].mxu0 %vm35_vm2, %v28_v8 }
  0x19   :  { %572 = vmatprep.mubr.msk.f32.mxu0 %vm666_vm0, %v664_v0 }
  0x1c   :  { %573 = vmatmul.mubr.msk.f32.gmra.mrb[8].mxu0 %vm35_vm2, %v29_v11 }
  0x1d   :  { %575 = vmatprep.mubr.msk.f32.mxu0 %vm666_vm0, %v664_v0 }
  0x20   :  { %576 = vmatmul.mubr.msk.f32.gmra.mrb[10].mxu0 %vm35_vm2, %v30_v13 }
  0xdf   :  { %v770_v15 = vpop.f32.mrb[0].mxu0 }
  0xe0   :  { %v189_v16 = vand.u32 2147483647, %v770_v15  ;;  %v562_v17 = vpop.f32.mrb[1].mxu0  ;;  %v177_v55 = vmax.f32 %v770_v15, 0.0  ;;  %vm181_vm6 = vcmp.ne.f32.partialorder %v770_v15, %v770_v15 }
  0xe2   :  { %v193_v18 = vsub.f32 0.0, %v189_v16 }
  0xe3   :  { %v773_v19 = vpop.f32.mrb[2].mxu0 }
  0xe4   :  { %v197_v20 = vmul.f32 1.442695, %v193_v18  ;;  %v190_v21 = vand.u32 2147483647, %v773_v19  ;;  %v565_v22 = vpop.f32.mrb[3].mxu0  ;;  %v178_v61 = vmax.f32 %v773_v19, 0.0  ;;  %vm182_vm7 = vcmp.ne.f32.partialorder %v773_v19, %v773_v19 }
  0xe6   :  { %632 = vpow2.f32 %v197_v20  ;;  %v194_v23 = vsub.f32 0.0, %v190_v21 }
  0xe7   :  { %v776_v24 = vpop.f32.mrb[4].mxu0 }
  0xe8   :  { %v199_v25 = vmul.f32 1.442695, %v194_v23  ;;  %v191_v26 = vand.u32 2147483647, %v776_v24  ;;  %v568_v27 = vpop.f32.mrb[5].mxu0  ;;  %v179_v14 = vmax.f32 %v776_v24, 0.0  ;;  %vm183_vm10 = vcmp.ne.f32.partialorder %v776_v24, %v776_v24 }
  0xe9   :  { %v163_v27 = vpop.f32.mrb[0].mxu1 }
  0xea   :  { %634 = vpow2.f32 %v199_v25  ;;  %v195_v28 = vsub.f32 0.0, %v191_v26  ;;  %v250_v25 = vld [vmem:[%s859_s3 + $0x8] sm:$0xff]  ;;  %v251_v26 = vld [vmem:[%s859_s3 + $0x10] sm:$0xff] }
  0xeb   :  { %v779_v29 = vpop.f32.mrb[6].mxu0 }
  0xec   :  { %v201_v30 = vmul.f32 1.442695, %v195_v28  ;;  %v192_v31 = vand.u32 2147483647, %v779_v29  ;;  %v571_v32 = vpop.f32.mrb[7].mxu0  ;;  %v180_v20 = vmax.f32 %v779_v29, 0.0  ;;  %vm184_vm11 = vcmp.ne.f32.partialorder %v779_v29, %v779_v29 }
  0xed   :  { %v580_v28 = vpop.f32.mrb[1].mxu1 }
  0xee   :  { %636 = vpow2.f32 %v201_v30  ;;  %v196_v33 = vsub.f32 0.0, %v192_v31 }
  0xef   :  { %v153_v31 = vpop.f32.mrb[8].mxu0 }
  0xf0   :  { %v633_v34 = vpop.eup %632  ;;  %v203_v35 = vmul.f32 1.442695, %v196_v33  ;;  %v574_v32 = vpop.f32.mrb[9].mxu0 }
  0xf1   :  { %v205_v36 = vadd.f32 1.0, %v633_v34  ;;  %v208_v39 = vmul.f32 -0.5, %v633_v34  ;;  %v211_v44 = vand.u32 2147483647, %v633_v34 }
  0xf2   :  { %638 = vpow2.f32 %v203_v35 }
  0xf3   :  { %640 = vlog2.f32 %v205_v36  ;;  %v209_v42 = vadd.f32 1.0, %v208_v39  ;;  %vm212_vm4 = vcmp.lt.f32.partialorder %v211_v44, 0.0004427343  ;;  %v158_v35 = vpop.f32.mrb[10].mxu0 }
  0xf4   :  { %v635_v37 = vpop.eup %634  ;;  %v577_v36 = vpop.f32.mrb[11].mxu0 }
  0xf5   :  { %v214_v38 = vadd.f32 1.0, %v635_v37  ;;  %v217_v43 = vmul.f32 -0.5, %v635_v37  ;;  %v210_v49 = vmul.f32 %v633_v34, %v209_v42  ;;  %v220_v52 = vand.u32 2147483647, %v635_v37 }
  0xf7   :  { %642 = vlog2.f32 %v214_v38  ;;  %v218_v50 = vadd.f32 1.0, %v217_v43  ;;  %vm221_vm5 = vcmp.lt.f32.partialorder %v220_v52, 0.0004427343 }
  0xf8   :  { %v637_v40 = vpop.eup %636 }
  0xf9   :  { %v223_v41 = vadd.f32 1.0, %v637_v40  ;;  %v226_v51 = vmul.f32 -0.5, %v637_v40  ;;  %v219_v57 = vmul.f32 %v635_v37, %v218_v50  ;;  %v229_v62 = vand.u32 2147483647, %v637_v40 }
  0xfa   :  { %v667_v37 = vmov 0.0|0.0  }
  0xfb   :  { %644 = vlog2.f32 %v223_v41  ;;  %v227_v58 = vadd.f32 1.0, %v226_v51  ;;  %vm230_vm8 = vcmp.lt.f32.partialorder %v229_v62, 0.0004427343 }
  0xfc   :  { %v639_v45 = vpop.eup %638 }
  0xfd   :  { %v641_v46 = vpop.eup %640  ;;  %v232_v47 = vadd.f32 1.0, %v639_v45  ;;  %v235_v59 = vmul.f32 -0.5, %v639_v45  ;;  %v228_v6 = vmul.f32 %v637_v40, %v227_v58  ;;  %v238_v8 = vand.u32 2147483647, %v639_v45 }
  0xfe   :  { %v207_v48 = vmul.f32 0.6931472, %v641_v46 }
  0xff   :  { %646 = vlog2.f32 %v232_v47  ;;  %v236_v7 = vadd.f32 1.0, %v235_v59  ;;  %vm239_vm9 = vcmp.lt.f32.partialorder %v238_v8, 0.0004427343 }
 0x100   :  { %v213_v53 = vsel %vm212_vm4, %v210_v49, %v207_v48 }
 0x101   :  { %v643_v54 = vpop.eup %642  ;;  %v241_v60 = vadd.f32 %v213_v53, %v177_v55  ;;  %v237_v17 = vmul.f32 %v639_v45, %v236_v7 }
 0x102   :  { %v216_v56 = vmul.f32 0.6931472, %v643_v54 }
 0x103   :  { %v245_v9 = vsel %vm181_vm6, %v770_v15, %v241_v60 }
 0x104   :  { %v222_v63 = vsel %vm221_vm5, %v219_v57, %v216_v56  ;;  %vm502_vm5 = vcmask 1043456  }
 0x105   :  { %v645_v3 = vpop.eup %644  ;;  %v242_v4 = vadd.f32 %v222_v63, %v178_v61 }
 0x106   :  { %v225_v5 = vmul.f32 0.6931472, %v645_v3 }
 0x107   :  { %v246_v10 = vsel %vm182_vm7, %v773_v19, %v242_v4 }
 0x108   :  { %v231_v11 = vsel %vm230_vm8, %v228_v6, %v225_v5  ;;  %v612_v12 = vpack.c.bf16 %v246_v10, %v245_v9 }
 0x109   :  { %v647_v13 = vpop.eup %646  ;;  %v243_v18 = vadd.f32 %v231_v11, %v179_v14 }
 0x10a   :  { %v234_v16 = vmul.f32 0.6931472, %v647_v13  ;;  %613 = vmatprep.subr.bf16.mxu1 %v612_v12 }
 0x10b   :  { %615 = vmatpush3.bf16.msra.mxu1 %v612_v12  ;;  %v247_v15 = vsel %vm183_vm10, %v776_v24, %v243_v18  ;;  %v252_v24 = vld [vmem:[%s859_s3 + $0x18] sm:$0xff] }
 0x10c   :  { %v240_v21 = vsel %vm239_vm9, %v237_v17, %v234_v16 }
 0x10d   :  { %v244_v22 = vadd.f32 %v240_v21, %v180_v20 }
 0x10f   :  { %v248_v19 = vsel %vm184_vm11, %v779_v29, %v244_v22  ;;  %v168_v29 = vpop.f32.mrb[2].mxu1 }
 0x110   :  { %v616_v23 = vpack.c.bf16 %v248_v19, %v247_v15  ;;  %v583_v30 = vpop.f32.mrb[3].mxu1 }
 0x111   :  { %v812_v33 = vpop.f32.mrb[4].mxu1 }
 0x112   :  { %617 = vmatprep.subr.bf16.mxu1 %v616_v23  ;;  %v586_v34 = vpop.f32.mrb[5].mxu1 }
 0x113   :  { %619 = vmatpush3.bf16.msra.mxu1 %v616_v23 }
 0x114   :  { %620 = vmatprep.subr.bf16.mxu1 %v667_v37 }
 0x116   :  { %596 = vmatmul.mubr.msk.f32.vlgmr.msra.gmra.mrb[6].mxu1 %vm253_vm3, %v250_v25 }
 0x117   :  { %598 = vmatprep.mubr.msk.f32.mxu1 %vm253_vm3, %v251_v26 }
 0x11a   :  { %599 = vmatmul.mubr.msk.f32.gmra.mrb[8].mxu1 %vm253_vm3, %v252_v24 }
 0x11b   :  { %609 = vmatprep.mubr.msk.f32.mxu1 %vm666_vm0, %v664_v0 }
 0x1e9   :  { %v597_v38 = vpop.f32.mrb[6].mxu1 }
 0x1ea   :  { %v815_v39 = vadd.f32 %v597_v38, %v158_v35  ;;  %v332_v40 = vpop.f32.mrb[7].mxu1 }
 0x1eb   :  { %v817_v41 = vadd.f32 %v332_v40, %v153_v31 }
 0x1ec   :  { %v368_v0 = vand.u32 2147483647, %v815_v39  ;;  %v356_v13 = vmax.f32 %v815_v39, 0.0  ;;  %vm360_vm14 = vcmp.ne.f32.partialorder %v815_v39, %v815_v39 }
 0x1ed   :  { %v367_v42 = vand.u32 2147483647, %v817_v41  ;;  %v600_v43 = vpop.f32.mrb[8].mxu1  ;;  %v355_v23 = vmax.f32 %v817_v41, 0.0  ;;  %vm359_vm15 = vcmp.ne.f32.partialorder %v817_v41, %v817_v41 }
 0x1ee   :  { %v372_v44 = vsub.f32 0.0, %v368_v0  ;;  %v821_v45 = vadd.f32 %v600_v43, %v168_v29  ;;  %v342_v46 = vpop.f32.mrb[9].mxu1 }
 0x1ef   :  { %v371_v47 = vsub.f32 0.0, %v367_v42  ;;  %v823_v48 = vadd.f32 %v342_v46, %v163_v27 }
 0x1f0   :  { %v377_v49 = vmul.f32 1.442695, %v372_v44  ;;  %v370_v50 = vand.u32 2147483647, %v821_v45  ;;  %v358_v30 = vmax.f32 %v821_v45, 0.0  ;;  %vm362_vm2 = vcmp.ne.f32.partialorder %v821_v45, %v821_v45 }
 0x1f1   :  { %v375_v51 = vmul.f32 1.442695, %v371_v47  ;;  %v369_v52 = vand.u32 2147483647, %v823_v48  ;;  %v357_v40 = vmax.f32 %v823_v48, 0.0  ;;  %vm361_vm4 = vcmp.ne.f32.partialorder %v823_v48, %v823_v48 }
 0x1f2   :  { %648 = vpow2.f32 %v377_v49  ;;  %v374_v53 = vsub.f32 0.0, %v370_v50  ;;  %v501_v50 = vmul.f32 %v702_v1, %v702_v1 }
 0x1f3   :  { %650 = vpow2.f32 %v375_v51  ;;  %v373_v54 = vsub.f32 0.0, %v369_v52 }
 0x1f4   :  { %v381_v55 = vmul.f32 1.442695, %v374_v53  ;;  %v503_v51 = vsel %vm502_vm5, %v501_v50, 0.0 }
 0x1f5   :  { %v379_v56 = vmul.f32 1.442695, %v373_v54  ;;  %v504_v52 = vrot.slane %v503_v51, 4 }
 0x1f6   :  { %652 = vpow2.f32 %v381_v55 }
 0x1f7   :  { %654 = vpow2.f32 %v379_v56  ;;  %v505_v53 = vadd.f32 %v504_v52, %v503_v51 }
 0x1fc   :  { %v649_v57 = vpop.eup %648 }
 0x1fd   :  { %v651_v58 = vpop.eup %650  ;;  %v392_v59 = vadd.f32 1.0, %v649_v57  ;;  %v395_v3 = vmul.f32 -0.5, %v649_v57  ;;  %v398_v7 = vand.u32 2147483647, %v649_v57 }
 0x1fe   :  { %v383_v60 = vadd.f32 1.0, %v651_v58  ;;  %v386_v5 = vmul.f32 -0.5, %v651_v58  ;;  %v389_v11 = vand.u32 2147483647, %v651_v58 }
 0x1ff   :  { %656 = vlog2.f32 %v392_v59  ;;  %v396_v6 = vadd.f32 1.0, %v395_v3  ;;  %vm399_vm12 = vcmp.lt.f32.partialorder %v398_v7, 0.0004427343 }
 0x200   :  { %v653_v61 = vpop.eup %652  ;;  %658 = vlog2.f32 %v383_v60  ;;  %v387_v9 = vadd.f32 1.0, %v386_v5  ;;  %vm390_vm13 = vcmp.lt.f32.partialorder %v389_v11, 0.0004427343 }
 0x201   :  { %v655_v62 = vpop.eup %654  ;;  %v410_v63 = vadd.f32 1.0, %v653_v61  ;;  %v413_v8 = vmul.f32 -0.5, %v653_v61  ;;  %v397_v17 = vmul.f32 %v649_v57, %v396_v6  ;;  %v416_v22 = vand.u32 2147483647, %v653_v61 }
 0x202   :  { %v401_v4 = vadd.f32 1.0, %v655_v62  ;;  %v404_v10 = vmul.f32 -0.5, %v655_v62  ;;  %v388_v21 = vmul.f32 %v651_v58, %v387_v9  ;;  %v407_v25 = vand.u32 2147483647, %v655_v62 }
 0x203   :  { %660 = vlog2.f32 %v410_v63  ;;  %v414_v18 = vadd.f32 1.0, %v413_v8  ;;  %vm417_vm0 = vcmp.lt.f32.partialorder %v416_v22, 0.0004427343 }
 0x204   :  { %662 = vlog2.f32 %v401_v4  ;;  %v405_v15 = vadd.f32 1.0, %v404_v10  ;;  %vm408_vm1 = vcmp.lt.f32.partialorder %v407_v25, 0.0004427343 }
 0x205   :  { %v415_v32 = vmul.f32 %v653_v61, %v414_v18 }
 0x206   :  { %v406_v35 = vmul.f32 %v655_v62, %v405_v15 }
 0x209   :  { %v657_v12 = vpop.eup %656 }
 0x20a   :  { %v659_v14 = vpop.eup %658  ;;  %v394_v16 = vmul.f32 0.6931472, %v657_v12 }
 0x20b   :  { %v385_v20 = vmul.f32 0.6931472, %v659_v14 }
 0x20c   :  { %v400_v19 = vsel %vm399_vm12, %v397_v17, %v394_v16 }
 0x20d   :  { %v661_v26 = vpop.eup %660  ;;  %v420_v24 = vadd.f32 %v400_v19, %v356_v13  ;;  %v391_v27 = vsel %vm390_vm13, %v388_v21, %v385_v20 }
 0x20e   :  { %v663_v28 = vpop.eup %662  ;;  %v419_v29 = vadd.f32 %v391_v27, %v355_v23  ;;  %v412_v31 = vmul.f32 0.6931472, %v661_v26 }
 0x20f   :  { %v403_v34 = vmul.f32 0.6931472, %v663_v28  ;;  %v424_v36 = vsel %vm360_vm14, %v815_v39, %v420_v24 }
 0x210   :  { %v418_v38 = vsel %vm417_vm0, %v415_v32, %v412_v31  ;;  %v423_v0 = vsel %vm359_vm15, %v817_v41, %v419_v29  ;;  %v427_v41 = vld [vmem:[%s860_s4] sm:$0x1] }
 0x211   :  { %v422_v42 = vadd.f32 %v418_v38, %v358_v30  ;;  %v409_v43 = vsel %vm408_vm1, %v406_v35, %v403_v34  ;;  %v621_v44 = vpack.c.bf16 %v424_v36, %v423_v0 }
 0x212   :  { %v421_v46 = vadd.f32 %v409_v43, %v357_v40 }
 0x213   :  { %622 = vmatpush3.bf16.msra.mxu1 %v621_v44  ;;  %v426_v47 = vsel %vm362_vm2, %v821_v45, %v422_v42  ;;  %v506_v45 = vrot.slane %v505_v53, 2 }
 0x214   :  { %623 = vmatprep.subr.bf16.mxu1 %v667_v37  ;;  %v425_v39 = vsel %vm361_vm4, %v823_v48, %v421_v46  ;;  %v510_v48 = vmul.f32 %v707_v2, %v707_v2 }
 0x215   :  { %v624_v49 = vpack.c.bf16 %v426_v47, %v425_v39  ;;  %v507_v54 = vadd.f32 %v506_v45, %v505_v53 }
 0x217   :  { %625 = vmatpush3.bf16.msra.mxu1 %v624_v49  ;;  %v508_v37 = vrot.slane %v507_v54, 1 }
 0x219   :  { %v509_v55 = vadd.f32 %v508_v37, %v507_v54 }
 0x21a   :  { %610 = vmatmul.mubr.msk.f32.vlgmr.msra.gmra.mrb[10].mxu1 %vm253_vm3, %v427_v41 }
 0x21b   :  { %v511_v56 = vadd.f32 %v510_v48, %v509_v55 }
 0x21d   :  { %v512_v57 = vmul.f32 0.01, %v511_v56 }
 0x2ed   :  { %v497_v58 = vpop.f32.mrb[10].mxu1 }
 0x2ee   :  { %v513_v59 = vadd.f32 %v497_v58, %v812_v33  ;;  %v611_v60 = vpop.f32.mrb[11].mxu1 }
 0x2f0   :  { %v514_v61 = vadd.f32 %v513_v59, %v512_v57 }
 0x2f2   :  { %515 = vst [vmem:[%s861_s5] sm:$0x1] %v514_v61 }

</bundles_post_ra>
